<compile_context>
chip_gen: v7x
topology: tpu7x:2x2x1
jax: 0.10.0
libtpu: 0.0.40
codegen_flags: <defaults>
</compile_context>

<pallas_src>
import jax
import jax.numpy as jnp
from jax.experimental import pallas as pl
from jax.experimental.pallas import tpu as pltpu

EPS = 1e-3
LANE = 128
_LB_CAP = 2048  # max lanes per tile (keeps VMEM use tiny on all generations)


def _pick_lb(hw):
    """Largest multiple of 128 that divides hw and is <= _LB_CAP."""
    best = LANE
    for k in range(1, _LB_CAP // LANE + 1):
        lb = k * LANE
        if hw % lb == 0:
            best = lb
    return best


def _stats_kernel(x_ref, psum_ref, psq_ref, acc_s, acc_q):
    # x_ref: (1, C, Lb) f32 ; psum/psq out: (C, 128) ; acc_s/acc_q: (C, 128) scratch
    n = pl.program_id(0)
    l = pl.program_id(1)

    @pl.when((n == 0) & (l == 0))
    def _init():
        acc_s[...] = jnp.zeros_like(acc_s)
        acc_q[...] = jnp.zeros_like(acc_q)

    x = x_ref[0]                      # (C, Lb)
    lb = x.shape[1]
    s = acc_s[...]
    q = acc_q[...]
    # Per-lane partial accumulation: VPU adds only; no per-tile XLU reduction.
    for j in range(lb // LANE):
        c = x[:, j * LANE:(j + 1) * LANE]
        s = s + c
        q = q + c * c
    acc_s[...] = s
    acc_q[...] = q

    @pl.when((n == pl.num_programs(0) - 1) & (l == pl.num_programs(1) - 1))
    def _finalize():
        psum_ref[...] = acc_s[...]
        psq_ref[...] = acc_q[...]


def _norm_kernel(x_ref, scale_ref, shift_ref, o_ref):
    # One multiply + one add per element (scale/shift precomputed per channel).
    o_ref[0] = x_ref[0] * scale_ref[...] + shift_ref[...]


def batchnorm2d_pallas(x_nchw, gamma, beta, eps=EPS):
    """Training-mode BatchNorm2d forward. x_nchw: (N,C,H,W) f32; gamma,beta: (C,)."""
    N, C, H, W = x_nchw.shape
    HW = H * W
    assert HW % LANE == 0, "H*W must be a multiple of 128 for lane-dense tiles"

    x = x_nchw.reshape(N, C, HW)          # zero-copy; no transposes
    lb = _pick_lb(HW)
    num_l = HW // lb
    count = float(N * HW)

    # ---------- pass 1: per-channel sum / sum-of-squares ----------
    psum, psq = pl.pallas_call(
        _stats_kernel,
        out_shape=(
            jax.ShapeDtypeStruct((C, LANE), jnp.float32),
            jax.ShapeDtypeStruct((C, LANE), jnp.float32),
        ),
        grid_spec=pltpu.PrefetchScalarGridSpec(
            num_scalar_prefetch=0,
            grid=(N, num_l),
            in_specs=[pl.BlockSpec((1, C, lb), lambda n, l: (n, 0, l))],
            out_specs=(
                pl.BlockSpec((C, LANE), lambda n, l: (0, 0)),
                pl.BlockSpec((C, LANE), lambda n, l: (0, 0)),
            ),
            scratch_shapes=[
                pltpu.VMEM((C, LANE), jnp.float32),
                pltpu.VMEM((C, LANE), jnp.float32),
            ],
        ),
        compiler_params=pltpu.CompilerParams(
            dimension_semantics=("arbitrary", "arbitrary")),
    )(x)

    # Tiny (C,)-sized finalize in plain JAX: mean/var -> fused scale/shift.
    total = jnp.sum(psum, axis=-1)
    total_sq = jnp.sum(psq, axis=-1)
    mean = total / count
    var = total_sq / count - mean * mean          # biased var (normalization path)
    inv_std = jax.lax.rsqrt(var + eps)
    scale = (gamma * inv_std).astype(x.dtype).reshape(C, 1)
    shift = (beta - mean * gamma * inv_std).astype(x.dtype).reshape(C, 1)

    # ---------- pass 2: y = x * scale + shift ----------
    y = pl.pallas_call(
        _norm_kernel,
        out_shape=jax.ShapeDtypeStruct((N, C, HW), x.dtype),
        grid_spec=pltpu.PrefetchScalarGridSpec(
            num_scalar_prefetch=0,
            grid=(N, num_l),
            in_specs=[
                pl.BlockSpec((1, C, lb), lambda n, l: (n, 0, l)),
                pl.BlockSpec((C, 1), lambda n, l: (0, 0)),
                pl.BlockSpec((C, 1), lambda n, l: (0, 0)),
            ],
            out_specs=pl.BlockSpec((1, C, lb), lambda n, l: (n, 0, l)),
        ),
        compiler_params=pltpu.CompilerParams(
            dimension_semantics=("parallel", "parallel")),
    )(x, scale, shift)

    # TODO(synk): running_mean / running_var buffer updates (momentum=0.01,
    # unbiased variance) are stateful tracking and not implemented here.
    return y.reshape(N, C, H, W)


if __name__ == "__main__":
    key = jax.random.PRNGKey(0)
    kx, kg, kb = jax.random.split(key, 3)

    # Small shapes consistent with the module: C must be 32 (BatchNorm2d(32)).
    N, C, H, W = 2, 32, 16, 16
    x = jax.random.normal(kx, (N, C, H, W), dtype=jnp.float32)
    gamma = 1.0 + 0.1 * jax.random.normal(kg, (C,), dtype=jnp.float32)
    beta = 0.1 * jax.random.normal(kb, (C,), dtype=jnp.float32)

    out = jax.block_until_ready(batchnorm2d_pallas(x, gamma, beta))

    # Reference (plain JAX, training-mode batchnorm).
    mean = jnp.mean(x, axis=(0, 2, 3), keepdims=True)
    var = jnp.mean((x - mean) ** 2, axis=(0, 2, 3), keepdims=True)
    ref = (x - mean) * jax.lax.rsqrt(var + EPS) * gamma.reshape(1, C, 1, 1) \
        + beta.reshape(1, C, 1, 1)
    assert out.shape == (N, C, H, W)
    assert jnp.max(jnp.abs(out - ref)) < 1e-4, float(jnp.max(jnp.abs(out - ref)))

    print("KERNEL_OK")
</pallas_src>

<mosaic_0001>
module attributes {stable_mosaic.version = 11 : i64} {
  func.func @_stats_kernel(%arg0: i32, %arg1: i32, %arg2: memref<1x32x256xf32, #tpu.memory_space<vmem>>, %arg3: memref<32x128xf32, #tpu.memory_space<vmem>>, %arg4: memref<32x128xf32, #tpu.memory_space<vmem>>, %arg5: memref<32x128xf32, #tpu.memory_space<vmem>>, %arg6: memref<32x128xf32, #tpu.memory_space<vmem>>) attributes {dimension_semantics = [#tpu.dimension_semantics<arbitrary>, #tpu.dimension_semantics<arbitrary>], iteration_bounds = array<i64: 2, 1>, scalar_prefetch = 0 : i64, scratch_operands = 2 : i64, tpu.core_type = #tpu.core_type<tc>, window_params = [{transform_indices = @transform_0, window_bounds = array<i64: 1, 32, 256>}, {pipeline_mode = #tpu.pipeline_mode<synchronous>, transform_indices = @transform_1, window_bounds = array<i64: 32, 128>}, {pipeline_mode = #tpu.pipeline_mode<synchronous>, transform_indices = @transform_2, window_bounds = array<i64: 32, 128>}]} {
    %c0_i32 = arith.constant 0 : i32
    %0 = arith.cmpi eq, %arg0, %c0_i32 : i32
    %c0_i32_0 = arith.constant 0 : i32
    %1 = arith.cmpi eq, %arg1, %c0_i32_0 : i32
    %2 = arith.andi %0, %1 : i1
    %3 = arith.extui %2 : i1 to i32
    %c0_i32_1 = arith.constant 0 : i32
    %4 = arith.cmpi ne, %3, %c0_i32_1 : i32
    scf.if %4 {
      %cst = arith.constant 0.000000e+00 : f32
      %24 = vector.broadcast %cst : f32 to vector<32x128xf32>
      %c0_14 = arith.constant 0 : index
      %c0_15 = arith.constant 0 : index
      %25 = vector.load %arg5[%c0_14, %c0_15] : memref<32x128xf32, #tpu.memory_space<vmem>>, vector<32x128xf32>
      tpu.vector_store %arg5[%c0_14, %c0_15], %24 {strides = array<i32>} : memref<32x128xf32, #tpu.memory_space<vmem>>, vector<32x128xf32>,
      %cst_16 = arith.constant 0.000000e+00 : f32
      %26 = vector.broadcast %cst_16 : f32 to vector<32x128xf32>
      %c0_17 = arith.constant 0 : index
      %c0_18 = arith.constant 0 : index
      %27 = vector.load %arg6[%c0_17, %c0_18] : memref<32x128xf32, #tpu.memory_space<vmem>>, vector<32x128xf32>
      tpu.vector_store %arg6[%c0_17, %c0_18], %26 {strides = array<i32>} : memref<32x128xf32, #tpu.memory_space<vmem>>, vector<32x128xf32>,
    } else {
    }
    %c0 = arith.constant 0 : index
    %c0_2 = arith.constant 0 : index
    %c0_3 = arith.constant 0 : index
    %5 = vector.load %arg2[%c0, %c0_2, %c0_3] : memref<1x32x256xf32, #tpu.memory_space<vmem>>, vector<1x32x256xf32>
    %6 = vector.shape_cast %5 : vector<1x32x256xf32> to vector<32x256xf32>
    %c0_4 = arith.constant 0 : index
    %c0_5 = arith.constant 0 : index
    %7 = vector.load %arg5[%c0_4, %c0_5] : memref<32x128xf32, #tpu.memory_space<vmem>>, vector<32x128xf32>
    %c0_6 = arith.constant 0 : index
    %c0_7 = arith.constant 0 : index
    %8 = vector.load %arg6[%c0_6, %c0_7] : memref<32x128xf32, #tpu.memory_space<vmem>>, vector<32x128xf32>
    %9 = vector.extract_strided_slice %6 {offsets = [0, 0], sizes = [32, 128], strides = [1, 1]} : vector<32x256xf32> to vector<32x128xf32>
    %10 = arith.addf %7, %9 : vector<32x128xf32>
    %11 = arith.mulf %9, %9 : vector<32x128xf32>
    %12 = arith.addf %8, %11 : vector<32x128xf32>
    %13 = vector.extract_strided_slice %6 {offsets = [0, 128], sizes = [32, 128], strides = [1, 1]} : vector<32x256xf32> to vector<32x128xf32>
    %14 = arith.addf %10, %13 : vector<32x128xf32>
    %15 = arith.mulf %13, %13 : vector<32x128xf32>
    %16 = arith.addf %12, %15 : vector<32x128xf32>
    %c0_8 = arith.constant 0 : index
    %c0_9 = arith.constant 0 : index
    %17 = vector.load %arg5[%c0_8, %c0_9] : memref<32x128xf32, #tpu.memory_space<vmem>>, vector<32x128xf32>
    tpu.vector_store %arg5[%c0_8, %c0_9], %14 {strides = array<i32>} : memref<32x128xf32, #tpu.memory_space<vmem>>, vector<32x128xf32>,
    %c0_10 = arith.constant 0 : index
    %c0_11 = arith.constant 0 : index
    %18 = vector.load %arg6[%c0_10, %c0_11] : memref<32x128xf32, #tpu.memory_space<vmem>>, vector<32x128xf32>
    tpu.vector_store %arg6[%c0_10, %c0_11], %16 {strides = array<i32>} : memref<32x128xf32, #tpu.memory_space<vmem>>, vector<32x128xf32>,
    %c1_i32 = arith.constant 1 : i32
    %19 = arith.cmpi eq, %arg0, %c1_i32 : i32
    %c0_i32_12 = arith.constant 0 : i32
    %20 = arith.cmpi eq, %arg1, %c0_i32_12 : i32
    %21 = arith.andi %19, %20 : i1
    %22 = arith.extui %21 : i1 to i32
    %c0_i32_13 = arith.constant 0 : i32
    %23 = arith.cmpi ne, %22, %c0_i32_13 : i32
    scf.if %23 {
      %c0_14 = arith.constant 0 : index
      %c0_15 = arith.constant 0 : index
      %24 = vector.load %arg5[%c0_14, %c0_15] : memref<32x128xf32, #tpu.memory_space<vmem>>, vector<32x128xf32>
      %c0_16 = arith.constant 0 : index
      %c0_17 = arith.constant 0 : index
      %25 = vector.load %arg3[%c0_16, %c0_17] : memref<32x128xf32, #tpu.memory_space<vmem>>, vector<32x128xf32>
      tpu.vector_store %arg3[%c0_16, %c0_17], %24 {strides = array<i32>} : memref<32x128xf32, #tpu.memory_space<vmem>>, vector<32x128xf32>,
      %c0_18 = arith.constant 0 : index
      %c0_19 = arith.constant 0 : index
      %26 = vector.load %arg6[%c0_18, %c0_19] : memref<32x128xf32, #tpu.memory_space<vmem>>, vector<32x128xf32>
      %c0_20 = arith.constant 0 : index
      %c0_21 = arith.constant 0 : index
      %27 = vector.load %arg4[%c0_20, %c0_21] : memref<32x128xf32, #tpu.memory_space<vmem>>, vector<32x128xf32>
      tpu.vector_store %arg4[%c0_20, %c0_21], %26 {strides = array<i32>} : memref<32x128xf32, #tpu.memory_space<vmem>>, vector<32x128xf32>,
    } else {
    }
    return
  }
  func.func @transform_0(%arg0: i32, %arg1: i32) -> (i32, i32, i32) {
    %c0_i32 = arith.constant 0 : i32
    %c0_i32_0 = arith.constant 0 : i32
    return %arg0, %c0_i32, %arg1 : i32, i32, i32
  }
  func.func @transform_1(%arg0: i32, %arg1: i32) -> (i32, i32) {
    %c0_i32 = arith.constant 0 : i32
    %c0_i32_0 = arith.constant 0 : i32
    %c0_i32_1 = arith.constant 0 : i32
    return %c0_i32, %c0_i32_0 : i32, i32
  }
  func.func @transform_2(%arg0: i32, %arg1: i32) -> (i32, i32) {
    %c0_i32 = arith.constant 0 : i32
    %c0_i32_0 = arith.constant 0 : i32
    %c0_i32_1 = arith.constant 0 : i32
    return %c0_i32, %c0_i32_0 : i32, i32
  }
}

</mosaic_0001>

<bundles_post_ra>
// kernel: tpu_custom_call.1
= control target key start
LH: loop header
LB: loop body
LE: loop exit
PB: predicated region body
PF: predicated region fallthrough
CT: control target
= control target key end

     0   :  { %8 = vsyncpa [#allocation5], 0  ;;  %s787_s0 = inlined_call_operand.hbm [shape: f32[2,32,256], index: 0, kind: input, shape index: {}]   ;;  %s788_s1 = inlined_call_operand.hbm [shape: f32[32,128], index: 1, kind: output, shape index: {0}]   ;;  %s789_s2 = inlined_call_operand.hbm [shape: f32[32,128], index: 2, kind: output, shape index: {1}]  }
   0x1   :  { %10 = vsyncpa [#allocation5 + $0x1], 0 }
   0x2   :  { %11 = vsyncpa [#allocation6], 0 }
   0x3   :  { %12 = vsyncpa [#allocation9], 0  ;;  %s602_s9 = smov 0   ;;  %s604_s10 = smov 0  }
   0x4   :  { %s606_s11 = smov 0   ;;  %s608_s12 = smov 0  }
   0x5   :  { %s610_s13 = smov 0   ;;  %s612_s14 = smov 0  }
   0x6 LB: > { %s344_s15 = sadd.s32 4294967295, %s577_s14   ;;  %s30_s16 = sadd.s32 1, %s573_s13  ;;  %s577_s14 = sphi %s612_s14, %s18_s14   ;;  %s573_s13 = sphi %s610_s13, %s798_s13   ;;  %s569_s12 = sphi %s608_s12, %s797_s12   ;;  %s565_s11 = sphi %s606_s11, %s796_s11   ;;  %s561_s10 = sphi %s604_s10, %s795_s10   ;;  %s557_s9 = sphi %s602_s9, %s794_s9  }
   0x7   : > { %p32_p0 = scmp.ge.s32.totalorder %s30_s16, 2  ;;  %s39_s17 = sadd.s32 1, %s565_s11 }
   0x8   : > { %p46_p1 = scmp.ne.s32.totalorder %s565_s11, %s561_s10  ;;  %p47_p2 = scmp.eq.s32.totalorder %s577_s14, 0 }
   0x9   : > { %s800_s16 = smov (%p32_p0, %s30_s16), 0  ;;  %p52_p4 = scmp.ne.s32.totalorder %s561_s10, %s557_s9 }
   0xa   : > { %p638_p3 = por %p47_p2, %p46_p1  ;;  %s34_s19 = ssub.s32 %s573_s13, %s800_s16 }
   0xb   : > { %p53_p5 = scmp.eq.s32.totalorder %s344_s15, 0  ;;  %p37_p6 = scmp.eq.s32.totalorder %s34_s19, 0 }
   0xc   : > { %p377_p8 = scmp.lt.s32.totalorder %s577_s14, 2  ;;  %s118_s22 = sand.u32 1, %s565_s11  }
   0xd   : > { %p647_p7 = por %p53_p5, %p52_p4  ;;  %s360_s23 = sshll.u32 %s573_s13, 10 }
   0xe   : > { %s653_s21 = scalar_select %p37_p6, %s565_s11, %s39_s17  }
   0xf   : > { %s347_s24 = sshll.u32 %s118_s22, 6  ;;  %s660_s27 = scalar_lea.hbm %s787_s0, %s360_s23 }
  0x10   : > { %s122_s28 = scalar_lea.vmem [#allocation4], %s347_s24  ;;  %p664_p9 = pnand %p377_p8, %p638_p3 }
  0x11   : > { %s131_s29 = sshll.u32 %s122_s28, 4  ;;  %s670_s3 = scalar_lea.sflag [#allocation5], %s118_s22  ;;  %s668_s29 = int_to_ptr.vmem [resolvable:$true] %s131_s29 }
  0x12   : > { %s437_s4 = scalar_lea.hbm %s660_s27, 1024  ;;  %p439_p11 = pneg %p664_p9 }
  0x13   : > { %p438_p10 = scmp.ne.s32.totalorder %s660_s27, %s437_s4  ;;  %s442_s7 = scalar_lea.hbm %s787_s0, 2048 }
  0x14   : > { %p443_p0 = scmp.lt.u32.totalorder %s660_s27, %s787_s0  ;;  %p444_p1 = scmp.lt.u32.totalorder %s442_s7, %s437_s4 }
  0x15   : > { %p440_p12 = pnand %p439_p11, %p438_p10  ;;  %p446_p3 = scmp.lt.u32.totalorder %s437_s4, %s660_s27 }
  0x16   : > { %p445_p2 = por %p444_p1, %p443_p0 }
  0x17   : > { %p441_p13 = pneg %p440_p12 }
  0x18   : > { %p447_p4 = por %p446_p3, %p445_p2 }
  0x1a   : > { %p448_p5 = pnand %p447_p4, %p441_p13 }
  0x1c   : > { %451 = shalt.err (!%p448_p5)
}
  0x1d   : > { %s452_s17 = scalar_lea.vmem %s668_s29, 1024  ;;  %s579_s18 = smov [#allocation4]  }
  0x1e   : > { %p453_p6 = scmp.ne.s32.totalorder %s668_s29, %s452_s17  ;;  %s457_s19 = sshll.u32 %s579_s18, 4  ;;  %s458_s19 = int_to_ptr.vmem [resolvable:$false] %s457_s19 }
  0x1f   : > { %s459_s22 = scalar_lea.vmem %s458_s19, 2048  ;;  %p460_p12 = scmp.lt.s32.totalorder %s668_s29, %s458_s19 }
  0x20   : > { %p455_p8 = pnand %p453_p6, %p439_p11  ;;  %p461_p0 = scmp.lt.s32.totalorder %s459_s22, %s452_s17 }
  0x22   : > { %p456_p10 = pneg %p455_p8  ;;  %p462_p1 = por %p461_p0, %p460_p12 }
  0x24   : > { %p463_p2 = pnand %p462_p1, %p456_p10 }
  0x26   : > { %466 = shalt.err (!%p463_p2)
}
  0x27   : > { %s580_s23 = smov 256   ;;  %s581_s24 = smov 16  }
  0x28   : > { %376 = dma.hbm_to_vmem [thread:$0]  (!%p664_p9), %s660_s27, 1024, %s668_s29, %s670_s3, %s580_s23, %s580_s23, %s581_s24  }
  0x29   : > { %p350_p11 = scmp.ge.s32.totalorder %s577_s14, 1  ;;  %p139_p13 = scmp.lt.s32.totalorder %s577_s14, 3 }
  0x2b   : > { %p140_p3 = pnand %p350_p11, %p139_p13 }
  0x2c   : > { %s145_s25 = sand.u32 (!%p140_p3), 1, %s561_s10  }
  0x2d   : > { %143 = sbr.rel (%p140_p3) target bundleno = 133 (0x85), region = 24  ;;  %s351_s26 = sshll.u32 (!%p140_p3), %s145_s25, 6 }
  0x2e   : > { %s146_s28 = scalar_lea.sflag (!%p140_p3), [#allocation5], %s145_s25  ;;  %s701_s4 = scalar_lea.vmem (!%p140_p3), [#allocation4], %s351_s26 }
  0x34   : > { %544 = dma.done.wait (%p647_p7), %s146_s28, 1024  }
  0x35   : > { %546 = vsyncadd (%p647_p7), %s146_s28, 4294966272  ;;  %p166_p4 = scmp.eq.s32.totalorder %s569_s12, 0 }
  0x36   : > { %v582_v0 = vmov (%p166_p4), 0.0  }
  0x37   : > { %171 = sbr.rel (!%p166_p4) target bundleno = 62 (0x3e), region = 32  ;;  %172 = vst [vmem:[#allocation2] sm:$0xff] (%p166_p4), %v582_v0  ;;  %173 = vst [vmem:[#allocation2 + $0x8] sm:$0xff] (%p166_p4), %v582_v0 }
  0x38   : > { %174 = vst [vmem:[#allocation2 + $0x10] sm:$0xff] (%p166_p4), %v582_v0  ;;  %175 = vst [vmem:[#allocation2 + $0x18] sm:$0xff] (%p166_p4), %v582_v0 }
  0x39   : > { %176 = vst [vmem:[#allocation3] sm:$0xff] (%p166_p4), %v582_v0  ;;  %177 = vst [vmem:[#allocation3 + $0x8] sm:$0xff] (%p166_p4), %v582_v0 }
  0x3a   : > { %178 = vst [vmem:[#allocation3 + $0x10] sm:$0xff] (%p166_p4), %v582_v0  ;;  %179 = vst [vmem:[#allocation3 + $0x18] sm:$0xff] (%p166_p4), %v582_v0 }
  0x3e PF: > { %v180_v1 = vld [vmem:[%s701_s4] sm:$0xff]  ;;  %v181_v2 = vld [vmem:[%s701_s4 + $0x8] sm:$0xff]  ;;  %p228_p7 = scmp.eq.s32.totalorder %s569_s12, 1  ;;  %v182_v5 = vld [vmem:[%s701_s4 + $0x10] sm:$0xff] }
  0x3f   : > { %v188_v3 = vld [vmem:[#allocation2] sm:$0xff]  ;;  %v183_v6 = vld [vmem:[%s701_s4 + $0x18] sm:$0xff]  ;;  %v189_v7 = vld [vmem:[#allocation2 + $0x8] sm:$0xff]  ;;  %v200_v8 = vmul.f32 %v180_v1, %v180_v1  ;;  %v212_v13 = vmul.f32 %v181_v2, %v181_v2  ;;  %v201_v14 = vmul.f32 %v182_v5, %v182_v5 }
  0x40   : > { %v196_v4 = vadd.f32 %v188_v3, %v180_v1  ;;  %v197_v9 = vadd.f32 %v189_v7, %v182_v5  ;;  %v184_v10 = vld [vmem:[%s701_s4 + $0x20] sm:$0xff]  ;;  %v185_v11 = vld [vmem:[%s701_s4 + $0x28] sm:$0xff]  ;;  %v190_v12 = vld [vmem:[#allocation2 + $0x10] sm:$0xff]  ;;  %v213_v15 = vmul.f32 %v183_v6, %v183_v6 }
  0x41   : > { %v198_v17 = vadd.f32 %v190_v12, %v184_v10  ;;  %v186_v18 = vld [vmem:[%s701_s4 + $0x30] sm:$0xff]  ;;  %v187_v19 = vld [vmem:[%s701_s4 + $0x38] sm:$0xff]  ;;  %v202_v21 = vmul.f32 %v184_v10, %v184_v10  ;;  %v214_v22 = vmul.f32 %v185_v11, %v185_v11  ;;  %v192_v25 = vld [vmem:[#allocation3] sm:$0xff] }
  0x42   : > { %v208_v16 = vadd.f32 %v196_v4, %v181_v2  ;;  %v191_v20 = vld [vmem:[#allocation2 + $0x18] sm:$0xff]  ;;  %v209_v23 = vadd.f32 %v197_v9, %v183_v6  ;;  %v193_v26 = vld [vmem:[#allocation3 + $0x8] sm:$0xff]  ;;  %v194_v27 = vld [vmem:[#allocation3 + $0x10] sm:$0xff]  ;;  %v203_v28 = vmul.f32 %v186_v18, %v186_v18  ;;  %v215_v29 = vmul.f32 %v187_v19, %v187_v19 }
  0x43   : > { %v199_v24 = vadd.f32 %v191_v20, %v186_v18  ;;  %v210_v30 = vadd.f32 %v198_v17, %v185_v11  ;;  %v204_v31 = vadd.f32 %v200_v8, %v192_v25  ;;  %v205_v32 = vadd.f32 %v201_v14, %v193_v26  ;;  %v195_v34 = vld [vmem:[#allocation3 + $0x18] sm:$0xff]  ;;  %232 = sbr.rel (!%p228_p7) target bundleno = 82 (0x52), region = 36 }
  0x44   : > { %220 = vst [vmem:[#allocation2] sm:$0xff] %v208_v16  ;;  %v206_v33 = vadd.f32 %v202_v21, %v194_v27  ;;  %221 = vst [vmem:[#allocation2 + $0x8] sm:$0xff] %v209_v23  ;;  %v207_v36 = vadd.f32 %v203_v28, %v195_v34 }
  0x45   : > { %v211_v35 = vadd.f32 %v199_v24, %v187_v19  ;;  %222 = vst [vmem:[#allocation2 + $0x10] sm:$0xff] %v210_v30  ;;  %v216_v37 = vadd.f32 %v212_v13, %v204_v31  ;;  %v217_v38 = vadd.f32 %v213_v15, %v205_v32 }
  0x46   : > { %v218_v39 = vadd.f32 %v214_v22, %v206_v33  ;;  %v219_v40 = vadd.f32 %v215_v29, %v207_v36 }
  0x47   : > { %223 = vst [vmem:[#allocation2 + $0x18] sm:$0xff] %v211_v35  ;;  %224 = vst [vmem:[#allocation3] sm:$0xff] %v216_v37 }
  0x48   : > { %225 = vst [vmem:[#allocation3 + $0x8] sm:$0xff] %v217_v38  ;;  %226 = vst [vmem:[#allocation3 + $0x10] sm:$0xff] %v218_v39 }
  0x49   : > { %227 = vst [vmem:[#allocation3 + $0x18] sm:$0xff] %v219_v40 }
  0x4b   : > { %v233_v41 = vld [vmem:[#allocation2] sm:$0xff]  ;;  %v234_v42 = vld [vmem:[#allocation2 + $0x8] sm:$0xff] }
  0x4c   : > { %v235_v43 = vld [vmem:[#allocation2 + $0x10] sm:$0xff]  ;;  %237 = vst [vmem:[#allocation7] sm:$0xff] %v233_v41  ;;  %238 = vst [vmem:[#allocation7 + $0x8] sm:$0xff] %v234_v42 }
  0x4d   : > { %239 = vst [vmem:[#allocation7 + $0x10] sm:$0xff] %v235_v43 }
  0x4e   : > { %v236_v44 = vld [vmem:[#allocation2 + $0x18] sm:$0xff]  ;;  %v241_v45 = vld [vmem:[#allocation3] sm:$0xff] }
  0x4f   : > { %v242_v46 = vld [vmem:[#allocation3 + $0x8] sm:$0xff]  ;;  %240 = vst [vmem:[#allocation7 + $0x18] sm:$0xff] %v236_v44  ;;  %245 = vst [vmem:[#allocation8] sm:$0xff] %v241_v45  ;;  %v243_v47 = vld [vmem:[#allocation3 + $0x10] sm:$0xff] }
  0x50   : > { %246 = vst [vmem:[#allocation8 + $0x8] sm:$0xff] %v242_v46  ;;  %v244_v48 = vld [vmem:[#allocation3 + $0x18] sm:$0xff]  ;;  %247 = vst [vmem:[#allocation8 + $0x10] sm:$0xff] %v243_v47 }
  0x51   : > { %248 = vst [vmem:[#allocation8 + $0x18] sm:$0xff] %v244_v48 }
  0x52 PF: > { %p721_p9 = scmp.eq.s32.totalorder %s344_s15, 1  ;;  %s583_s20 = smov [#allocation7]  }
  0x53   : > { %s255_s27 = sshll.u32 %s583_s20, 4  ;;  %s256_s27 = int_to_ptr.vmem [resolvable:$true] %s255_s27 }
  0x54   : > { %s467_s29 = scalar_lea.vmem %s256_s27, 512  ;;  %p474_p10 = scmp.lt.s32.totalorder %s256_s27, %s256_s27 }
  0x55   : > { %p468_p5 = scmp.ne.s32.totalorder %s256_s27, %s467_s29  ;;  %p475_p12 = scmp.lt.s32.totalorder %s467_s29, %s467_s29 }
  0x57   : > { %p469_p6 = pnand %p468_p5, %p721_p9  ;;  %p476_p0 = por %p475_p12, %p474_p10 }
  0x59   : > { %p470_p8 = pneg %p469_p6 }
  0x5b   : > { %p477_p1 = pnand %p476_p0, %p470_p8 }
  0x5d   : > { %480 = shalt.err (!%p477_p1)
}
  0x5e   : > { %s481_s15 = scalar_lea.hbm %s788_s1, 512 }
  0x5f   : > { %p482_p2 = scmp.ne.s32.totalorder %s788_s1, %s481_s15  ;;  %p487_p3 = scmp.lt.u32.totalorder %s481_s15, %s788_s1 }
  0x61   : > { %p483_p11 = pnand %p482_p2, %p721_p9 }
  0x63   : > { %p484_p13 = pneg %p483_p11 }
  0x65   : > { %p489_p4 = pnand %p487_p3, %p484_p13 }
  0x67   : > { %492 = shalt.err (!%p489_p4)
}
  0x68   : > { %s584_s9 = smov 128   ;;  %s585_s17 = smov 8  }
  0x69   : > { %366 = dma.vmem_to_hbm [thread:$0]  (%p721_p9), %s256_s27, 512, %s788_s1, [#allocation6], %s584_s9, %s584_s9, %s585_s17  }
  0x6a   : > { %s586_s22 = smov [#allocation8]  }
  0x6b   : > { %s268_s23 = sshll.u32 %s586_s22, 4  ;;  %s269_s23 = int_to_ptr.vmem [resolvable:$true] %s268_s23 }
  0x6c   : > { %s493_s24 = scalar_lea.vmem %s269_s23, 512  ;;  %p500_p8 = scmp.lt.s32.totalorder %s269_s23, %s269_s23 }
  0x6d   : > { %p494_p7 = scmp.ne.s32.totalorder %s269_s23, %s493_s24  ;;  %p501_p10 = scmp.lt.s32.totalorder %s493_s24, %s493_s24 }
  0x6f   : > { %p495_p5 = pnand %p494_p7, %p721_p9  ;;  %p502_p12 = por %p501_p10, %p500_p8 }
  0x71   : > { %p496_p6 = pneg %p495_p5 }
  0x73   : > { %p503_p0 = pnand %p502_p12, %p496_p6 }
  0x75   : > { %506 = shalt.err (!%p503_p0)
}
  0x76   : > { %s507_s28 = scalar_lea.hbm %s789_s2, 512 }
  0x77   : > { %p508_p1 = scmp.ne.s32.totalorder %s789_s2, %s507_s28  ;;  %p513_p13 = scmp.lt.u32.totalorder %s507_s28, %s789_s2 }
  0x79   : > { %p509_p2 = pnand %p508_p1, %p721_p9 }
  0x7b   : > { %p510_p11 = pneg %p509_p2 }
  0x7d   : > { %p515_p3 = pnand %p513_p13, %p510_p11 }
  0x7f   : > { %518 = shalt.err (!%p515_p3)
}
  0x80   : > { %368 = dma.vmem_to_hbm [thread:$0]  (%p721_p9), %s269_s23, 512, %s789_s2, [#allocation9], %s584_s9, %s584_s9, %s585_s17  }
  0x81   : > { %548 = dma.done.wait (%p721_p9), [#allocation6], 512  }
  0x82   : > { %550 = vsyncadd (%p721_p9), [#allocation6], 4294966784 }
  0x83   : > { %552 = dma.done.wait (%p721_p9), [#allocation9], 512  }
  0x84   : > { %554 = vsyncadd (%p721_p9), [#allocation9], 4294966784 }
  0x85 PF: > { %s18_s14 = sadd.s32 1, %s577_s14   ;;  %s794_s9 = smov %s561_s10 }
  0x86   : > { %p15_p4 = scmp.ge.s32.totalorder %s18_s14, 4   ;;  %s795_s10 = smov %s565_s11 }
  0x87   : > { %s796_s11 = smov %s653_s21  ;;  %s797_s12 = smov %s573_s13 }
  0x88   : > { %s798_s13 = smov %s800_s16  ;;  %17 = sbr.rel (!%p15_p4) target bundleno = 6 (0x6), region = 77 }
  0x8f   :  { %288 = vsyncpa [#allocation5], 1 }
  0x90   :  { %290 = vsyncpa [#allocation5 + $0x1], 1 }
  0x91   :  { %291 = vsyncpa [#allocation6], 1 }
  0x92   :  { %293 = vsyncpa [#allocation6 + $0x1], 1 }
  0x93   :  { %294 = vsyncpa [#allocation9], 1 }

</bundles_post_ra>
